<compile_context>
chip_gen: v7x
topology: tpu7x:2x2x1
jax: 0.10.0
libtpu: 0.0.40
codegen_flags: <defaults>
</compile_context>

<pallas_src>
import functools

import jax
import jax.numpy as jnp
from jax.experimental import pallas as pl
from jax.experimental.pallas import tpu as pltpu

HID = 120            # fc1 output size
ACTION_SIZE = 9      # game.action_size (3x3 board -> 9 actions)
HEAD_PAD = 128       # fused actor+critic head, padded to one full lane register
C1, C2, C3 = 8, 16, 32
NPIX = 9             # 3x3 board
MAX_TILE_B = 2048    # default batch-tile cap; ~<16 MiB/step worst case in VMEM
VMEM_LIMIT_BYTES = 32 * 1024 * 1024   # > v5e 16 MiB scoped default, < v7x 64 MiB physical


def actor_critic_kernel(x_ref,                  # (TB, 9)      f32
                        w1_ref, b1_ref,         # (9, 72)   bf16, (1, 72)  f32
                        w2_ref, b2_ref,         # (72, 144) bf16, (1, 144) f32
                        w3_ref, b3_ref,         # (144,288) bf16, (1, 288) f32
                        wfc_ref, bfc_ref,       # (288,120) bf16, (1, 120) f32
                        wh_ref, bh_ref,         # (120,128) bf16, (1, 128) f32
                        out_ref):               # (TB, 128) f32  [policy | value | 0-pad]
    f32 = jnp.float32
    bf16 = jnp.bfloat16
    x = x_ref[...].astype(bf16)
    # conv1/conv2/conv3 as block-diagonal dense matmuls (per-pixel 1x1 convs) + ReLU.
    # bf16 operands, f32 accumulate; bias-add / ReLU stay in f32 (v5e VPU has no bf16).
    h1 = jnp.maximum(jnp.dot(x, w1_ref[...], preferred_element_type=f32) + b1_ref[...], 0.0)
    h2 = jnp.maximum(
        jnp.dot(h1.astype(bf16), w2_ref[...], preferred_element_type=f32) + b2_ref[...], 0.0)
    h3 = jnp.maximum(
        jnp.dot(h2.astype(bf16), w3_ref[...], preferred_element_type=f32) + b3_ref[...], 0.0)
    # fc1 (+ReLU) as a single 288-contraction.
    h = jnp.maximum(
        jnp.dot(h3.astype(bf16), wfc_ref[...], preferred_element_type=f32) + bfc_ref[...], 0.0)
    # Fused actor+critic head, lane-dense 128-wide f32 output slab.
    out_ref[...] = jnp.dot(h.astype(bf16), wh_ref[...], preferred_element_type=f32) + bh_ref[...]


def init_params(key, action_size=ACTION_SIZE):
    """Deterministic synthetic parameters with the same shapes as the PyTorch module."""
    ks = jax.random.split(key, 12)
    s = 0.1
    return {
        "conv1_w": jax.random.normal(ks[0], (C1, 1, 1, 1), jnp.float32) * s,
        "conv1_b": jax.random.normal(ks[1], (C1,), jnp.float32) * s,
        "conv2_w": jax.random.normal(ks[2], (C2, C1, 1, 1), jnp.float32) * s,
        "conv2_b": jax.random.normal(ks[3], (C2,), jnp.float32) * s,
        "conv3_w": jax.random.normal(ks[4], (C3, C2, 1, 1), jnp.float32) * s,
        "conv3_b": jax.random.normal(ks[5], (C3,), jnp.float32) * s,
        "fc1_w": jax.random.normal(ks[6], (HID, C3 * NPIX), jnp.float32) * s,
        "fc1_b": jax.random.normal(ks[7], (HID,), jnp.float32) * s,
        "actor_w": jax.random.normal(ks[8], (action_size, HID), jnp.float32) * s,
        "actor_b": jax.random.normal(ks[9], (action_size,), jnp.float32) * s,
        "critic_w": jax.random.normal(ks[10], (1, HID), jnp.float32) * s,
        "critic_b": jax.random.normal(ks[11], (1,), jnp.float32) * s,
    }


def pack_params_for_kernel(p):
    """Repack PyTorch-layout params into the batched-matmul layouts the kernel expects.

    Weight matrices are stored in bf16 (MXU operand precision); biases stay f32.
    """
    bf16 = jnp.bfloat16
    action_size = p["actor_w"].shape[0]
    w1 = p["conv1_w"].reshape(C1, 1).T          # (1, 8)
    w2 = p["conv2_w"].reshape(C2, C1).T         # (8, 16)
    w3 = p["conv3_w"].reshape(C3, C2).T         # (16, 32)
    eye9 = jnp.eye(NPIX, dtype=jnp.float32)
    # Block-diagonal (per-pixel) conv weights: column order p*C + c.
    w1_big = jnp.kron(eye9, w1).astype(bf16)    # (9, 72)
    w2_big = jnp.kron(eye9, w2).astype(bf16)    # (72, 144)
    w3_big = jnp.kron(eye9, w3).astype(bf16)    # (144, 288)
    b1 = jnp.tile(p["conv1_b"], NPIX).reshape(1, NPIX * C1)    # (1, 72)
    b2 = jnp.tile(p["conv2_b"], NPIX).reshape(1, NPIX * C2)    # (1, 144)
    b3 = jnp.tile(p["conv3_b"], NPIX).reshape(1, NPIX * C3)    # (1, 288)
    # PyTorch flatten column index = c*9 + p; kernel h3 column index = p*32 + c.
    # wfc[p*32 + c, j] = fc1_w[j, c*9 + p]
    wfc = jnp.transpose(p["fc1_w"].reshape(HID, C3, NPIX), (2, 1, 0)).reshape(NPIX * C3, HID)
    wfc = wfc.astype(bf16)
    bfc = p["fc1_b"].reshape(1, HID)
    # Fused, lane-padded head: cols [0:A] = actor, col A = critic, rest zero.
    wh = jnp.zeros((HID, HEAD_PAD), jnp.float32)
    wh = wh.at[:, :action_size].set(p["actor_w"].T)
    wh = wh.at[:, action_size].set(p["critic_w"][0])
    wh = wh.astype(bf16)
    bh = jnp.zeros((1, HEAD_PAD), jnp.float32)
    bh = bh.at[:, :action_size].set(p["actor_b"].reshape(1, action_size))
    bh = bh.at[:, action_size].set(p["critic_b"][0])
    return (w1_big, b1, w2_big, b2, w3_big, b3, wfc, bfc, wh, bh)


def _round_up(x, m):
    return ((x + m - 1) // m) * m


def _cdiv(a, b):
    return (a + b - 1) // b


def _choose_tile(batch, max_tile_b):
    """Pick (tile_b, padded_batch) adaptively.

    - >= 2 grid steps whenever batch > 8 so v7x megacore ("parallel" batch axis) uses
      both TensorCores; harmless extra step on single-TC v5e/v6e.
    - tile ~ ceil(batch / n_steps) rounded to 8, capped at max_tile_b, so padding waste
      is bounded instead of paying a full fixed-size tile for a small remainder.
    """
    max_tile_b = max(8, _round_up(max_tile_b, 8))
    b8 = _round_up(max(batch, 1), 8)
    if b8 <= 8:
        return 8, 8
    n_steps = max(2, _cdiv(b8, max_tile_b))
    tb = min(max_tile_b, _round_up(_cdiv(b8, n_steps), 8))
    b_pad = _round_up(b8, tb)
    return tb, b_pad


@functools.partial(jax.jit, static_argnames=("max_tile_b",))
def actor_critic_forward(x_nchw, params, max_tile_b=MAX_TILE_B):
    """x_nchw: (B, 1, 3, 3) float32 (PyTorch NCHW). Returns (policy (B, A), value (B, 1))."""
    B = x_nchw.shape[0]
    assert x_nchw.shape[1:] == (1, 3, 3)
    action_size = params["actor_w"].shape[0]
    assert action_size + 1 <= HEAD_PAD

    x_pix = x_nchw.reshape(B, NPIX).astype(jnp.float32)   # p = h*3 + w, single channel
    kp = pack_params_for_kernel(params)

    # Adaptive batch tiling (>=2 steps for megacore, bounded padding waste).
    tb, b_pad = _choose_tile(B, max_tile_b)
    if b_pad != B:
        x_pix = jnp.pad(x_pix, ((0, b_pad - B), (0, 0)))
    grid = (b_pad // tb,)

    # Weights are resident: full-array blocks with constant index_maps (fetched once).
    weight_specs = [pl.BlockSpec(w.shape, lambda i: (0, 0)) for w in kp]

    flops = 2 * b_pad * (NPIX * NPIX * C1            # conv1: (9)x(9,72)
                         + NPIX * C1 * NPIX * C2     # conv2: (72)x(72,144)
                         + NPIX * C2 * NPIX * C3     # conv3: (144)x(144,288)
                         + NPIX * C3 * HID           # fc1:   (288)x(288,120)
                         + HID * HEAD_PAD)           # head:  (120)x(120,128)
    w_bytes = sum(int(w.size) * w.dtype.itemsize for w in kp)
    bytes_accessed = 4 * b_pad * NPIX + 4 * b_pad * HEAD_PAD + w_bytes

    out = pl.pallas_call(
        actor_critic_kernel,
        out_shape=jax.ShapeDtypeStruct((b_pad, HEAD_PAD), jnp.float32),
        grid=grid,
        in_specs=[pl.BlockSpec((tb, NPIX), lambda i: (i, 0))] + weight_specs,
        out_specs=pl.BlockSpec((tb, HEAD_PAD), lambda i: (i, 0)),
        compiler_params=pltpu.CompilerParams(
            dimension_semantics=("parallel",),
            vmem_limit_bytes=VMEM_LIMIT_BYTES),
        cost_estimate=pl.CostEstimate(flops=flops, transcendentals=0,
                                      bytes_accessed=bytes_accessed),
    )(x_pix, *kp)

    policy = out[:B, :action_size]
    value = out[:B, action_size:action_size + 1]
    return policy, value


def reference_forward(x_nchw, p):
    """Pure-JAX replica of the PyTorch forward (for correctness checking)."""
    B = x_nchw.shape[0]
    w1 = p["conv1_w"].reshape(C1, 1)
    w2 = p["conv2_w"].reshape(C2, C1)
    w3 = p["conv3_w"].reshape(C3, C2)
    h = jax.nn.relu(jnp.einsum("bchw,kc->bkhw", x_nchw, w1)
                    + p["conv1_b"][None, :, None, None])
    h = jax.nn.relu(jnp.einsum("bchw,kc->bkhw", h, w2)
                    + p["conv2_b"][None, :, None, None])
    h = jax.nn.relu(jnp.einsum("bchw,kc->bkhw", h, w3)
                    + p["conv3_b"][None, :, None, None])
    xf = h.reshape(B, C3 * NPIX)                       # NCHW flatten: c*9 + h*3 + w
    xf = jax.nn.relu(xf @ p["fc1_w"].T + p["fc1_b"])
    policy = xf @ p["actor_w"].T + p["actor_b"]
    value = xf @ p["critic_w"].T + p["critic_b"]
    return policy, value


def _check(policy, value, ref_policy, ref_value, B, action_size):
    assert policy.shape == (B, action_size) and value.shape == (B, 1)
    # Tolerance: layout/packing bugs produce O(0.1-1) errors; the remaining gap is only
    # bf16 operand rounding (which the MXU applies at default precision anyway) plus
    # accumulation-order noise, well under 5e-3 at these magnitudes.
    assert jnp.allclose(policy, ref_policy, rtol=5e-3, atol=5e-3)
    assert jnp.allclose(value, ref_value, rtol=5e-3, atol=5e-3)


if __name__ == "__main__":
    key = jax.random.PRNGKey(0)
    k_x, k_p, k_x2, k_x3 = jax.random.split(key, 4)
    params = init_params(k_p, ACTION_SIZE)

    # Small-batch check (the shape the PyTorch module sees: NCHW (B, 1, 3, 3)).
    B = 2
    x = jax.random.normal(k_x, (B, 1, 3, 3), jnp.float32)
    policy, value = jax.block_until_ready(actor_critic_forward(x, params))
    ref_policy, ref_value = reference_forward(x, params)
    _check(policy, value, ref_policy, ref_value, B, ACTION_SIZE)

    # Multi-step grid + batch padding check (B not a multiple of the tile).
    B2 = 37
    x2 = jax.random.normal(k_x2, (B2, 1, 3, 3), jnp.float32)
    policy2, value2 = jax.block_until_ready(actor_critic_forward(x2, params, max_tile_b=16))
    ref_policy2, ref_value2 = reference_forward(x2, params)
    _check(policy2, value2, ref_policy2, ref_value2, B2, ACTION_SIZE)

    # Default adaptive tiling path: medium batch splits into >=2 steps automatically.
    B3 = 600
    x3 = jax.random.normal(k_x3, (B3, 1, 3, 3), jnp.float32)
    policy3, value3 = jax.block_until_ready(actor_critic_forward(x3, params))
    ref_policy3, ref_value3 = reference_forward(x3, params)
    _check(policy3, value3, ref_policy3, ref_value3, B3, ACTION_SIZE)

    print("KERNEL_OK")
</pallas_src>

<mosaic_0001>
module attributes {stable_mosaic.version = 11 : i64} {
  func.func @actor_critic_kernel(%arg0: i32, %arg1: memref<8x9xf32, #tpu.memory_space<vmem>>, %arg2: memref<9x72xbf16, #tpu.memory_space<vmem>>, %arg3: memref<1x72xf32, #tpu.memory_space<vmem>>, %arg4: memref<72x144xbf16, #tpu.memory_space<vmem>>, %arg5: memref<1x144xf32, #tpu.memory_space<vmem>>, %arg6: memref<144x288xbf16, #tpu.memory_space<vmem>>, %arg7: memref<1x288xf32, #tpu.memory_space<vmem>>, %arg8: memref<288x120xbf16, #tpu.memory_space<vmem>>, %arg9: memref<1x120xf32, #tpu.memory_space<vmem>>, %arg10: memref<120x128xbf16, #tpu.memory_space<vmem>>, %arg11: memref<1x128xf32, #tpu.memory_space<vmem>>, %arg12: memref<8x128xf32, #tpu.memory_space<vmem>>) attributes {dimension_semantics = [#tpu.dimension_semantics<parallel>], iteration_bounds = array<i64: 1>, scalar_prefetch = 0 : i64, scratch_operands = 0 : i64, tpu.core_type = #tpu.core_type<tc>, window_params = [{transform_indices = @transform_0, window_bounds = array<i64: 8, 9>}, {pipeline_mode = #tpu.pipeline_mode<synchronous>, transform_indices = @transform_1, window_bounds = array<i64: 9, 72>}, {pipeline_mode = #tpu.pipeline_mode<synchronous>, transform_indices = @transform_2, window_bounds = array<i64: 1, 72>}, {pipeline_mode = #tpu.pipeline_mode<synchronous>, transform_indices = @transform_3, window_bounds = array<i64: 72, 144>}, {pipeline_mode = #tpu.pipeline_mode<synchronous>, transform_indices = @transform_4, window_bounds = array<i64: 1, 144>}, {pipeline_mode = #tpu.pipeline_mode<synchronous>, transform_indices = @transform_5, window_bounds = array<i64: 144, 288>}, {pipeline_mode = #tpu.pipeline_mode<synchronous>, transform_indices = @transform_6, window_bounds = array<i64: 1, 288>}, {pipeline_mode = #tpu.pipeline_mode<synchronous>, transform_indices = @transform_7, window_bounds = array<i64: 288, 120>}, {pipeline_mode = #tpu.pipeline_mode<synchronous>, transform_indices = @transform_8, window_bounds = array<i64: 1, 120>}, {pipeline_mode = #tpu.pipeline_mode<synchronous>, transform_indices = @transform_9, window_bounds = array<i64: 120, 128>}, {pipeline_mode = #tpu.pipeline_mode<synchronous>, transform_indices = @transform_10, window_bounds = array<i64: 1, 128>}, {transform_indices = @transform_11, window_bounds = array<i64: 8, 128>}]} {
    %c0 = arith.constant 0 : index
    %c0_0 = arith.constant 0 : index
    %0 = vector.load %arg1[%c0, %c0_0] : memref<8x9xf32, #tpu.memory_space<vmem>>, vector<8x9xf32>
    %1 = arith.truncf %0 : vector<8x9xf32> to vector<8x9xbf16>
    %c0_1 = arith.constant 0 : index
    %c0_2 = arith.constant 0 : index
    %2 = vector.load %arg2[%c0_1, %c0_2] : memref<9x72xbf16, #tpu.memory_space<vmem>>, vector<9x72xbf16>
    %cst = arith.constant dense<0.000000e+00> : vector<8x72xf32>
    %3 = tpu.matmul %1, %2, %cst {dimension_numbers = #tpu.dot_dimension_numbers<[1], [0], [0], [1], [0, 0, 1, 1], [], []>} : vector<8x9xbf16>, vector<9x72xbf16>, vector<8x72xf32> -> vector<8x72xf32>
    %c0_3 = arith.constant 0 : index
    %c0_4 = arith.constant 0 : index
    %4 = vector.load %arg3[%c0_3, %c0_4] : memref<1x72xf32, #tpu.memory_space<vmem>>, vector<1x72xf32>
    %5 = vector.broadcast %4 : vector<1x72xf32> to vector<8x72xf32>
    %6 = arith.addf %3, %5 : vector<8x72xf32>
    %cst_5 = arith.constant 0.000000e+00 : f32
    %7 = vector.broadcast %cst_5 : f32 to vector<8x72xf32>
    %8 = arith.maximumf %6, %7 : vector<8x72xf32>
    %9 = arith.truncf %8 : vector<8x72xf32> to vector<8x72xbf16>
    %c0_6 = arith.constant 0 : index
    %c0_7 = arith.constant 0 : index
    %10 = vector.load %arg4[%c0_6, %c0_7] : memref<72x144xbf16, #tpu.memory_space<vmem>>, vector<72x144xbf16>
    %cst_8 = arith.constant dense<0.000000e+00> : vector<8x144xf32>
    %11 = tpu.matmul %9, %10, %cst_8 {dimension_numbers = #tpu.dot_dimension_numbers<[1], [0], [0], [1], [0, 0, 1, 1], [], []>} : vector<8x72xbf16>, vector<72x144xbf16>, vector<8x144xf32> -> vector<8x144xf32>
    %c0_9 = arith.constant 0 : index
    %c0_10 = arith.constant 0 : index
    %12 = vector.load %arg5[%c0_9, %c0_10] : memref<1x144xf32, #tpu.memory_space<vmem>>, vector<1x144xf32>
    %13 = vector.broadcast %12 : vector<1x144xf32> to vector<8x144xf32>
    %14 = arith.addf %11, %13 : vector<8x144xf32>
    %cst_11 = arith.constant 0.000000e+00 : f32
    %15 = vector.broadcast %cst_11 : f32 to vector<8x144xf32>
    %16 = arith.maximumf %14, %15 : vector<8x144xf32>
    %17 = arith.truncf %16 : vector<8x144xf32> to vector<8x144xbf16>
    %c0_12 = arith.constant 0 : index
    %c0_13 = arith.constant 0 : index
    %18 = vector.load %arg6[%c0_12, %c0_13] : memref<144x288xbf16, #tpu.memory_space<vmem>>, vector<144x288xbf16>
    %cst_14 = arith.constant dense<0.000000e+00> : vector<8x288xf32>
    %19 = tpu.matmul %17, %18, %cst_14 {dimension_numbers = #tpu.dot_dimension_numbers<[1], [0], [0], [1], [0, 0, 1, 1], [], []>} : vector<8x144xbf16>, vector<144x288xbf16>, vector<8x288xf32> -> vector<8x288xf32>
    %c0_15 = arith.constant 0 : index
    %c0_16 = arith.constant 0 : index
    %20 = vector.load %arg7[%c0_15, %c0_16] : memref<1x288xf32, #tpu.memory_space<vmem>>, vector<1x288xf32>
    %21 = vector.broadcast %20 : vector<1x288xf32> to vector<8x288xf32>
    %22 = arith.addf %19, %21 : vector<8x288xf32>
    %cst_17 = arith.constant 0.000000e+00 : f32
    %23 = vector.broadcast %cst_17 : f32 to vector<8x288xf32>
    %24 = arith.maximumf %22, %23 : vector<8x288xf32>
    %25 = arith.truncf %24 : vector<8x288xf32> to vector<8x288xbf16>
    %c0_18 = arith.constant 0 : index
    %c0_19 = arith.constant 0 : index
    %26 = vector.load %arg8[%c0_18, %c0_19] : memref<288x120xbf16, #tpu.memory_space<vmem>>, vector<288x120xbf16>
    %cst_20 = arith.constant dense<0.000000e+00> : vector<8x120xf32>
    %27 = tpu.matmul %25, %26, %cst_20 {dimension_numbers = #tpu.dot_dimension_numbers<[1], [0], [0], [1], [0, 0, 1, 1], [], []>} : vector<8x288xbf16>, vector<288x120xbf16>, vector<8x120xf32> -> vector<8x120xf32>
    %c0_21 = arith.constant 0 : index
    %c0_22 = arith.constant 0 : index
    %28 = vector.load %arg9[%c0_21, %c0_22] : memref<1x120xf32, #tpu.memory_space<vmem>>, vector<1x120xf32>
    %29 = vector.broadcast %28 : vector<1x120xf32> to vector<8x120xf32>
    %30 = arith.addf %27, %29 : vector<8x120xf32>
    %cst_23 = arith.constant 0.000000e+00 : f32
    %31 = vector.broadcast %cst_23 : f32 to vector<8x120xf32>
    %32 = arith.maximumf %30, %31 : vector<8x120xf32>
    %33 = arith.truncf %32 : vector<8x120xf32> to vector<8x120xbf16>
    %c0_24 = arith.constant 0 : index
    %c0_25 = arith.constant 0 : index
    %34 = vector.load %arg10[%c0_24, %c0_25] : memref<120x128xbf16, #tpu.memory_space<vmem>>, vector<120x128xbf16>
    %cst_26 = arith.constant dense<0.000000e+00> : vector<8x128xf32>
    %35 = tpu.matmul %33, %34, %cst_26 {dimension_numbers = #tpu.dot_dimension_numbers<[1], [0], [0], [1], [0, 0, 1, 1], [], []>} : vector<8x120xbf16>, vector<120x128xbf16>, vector<8x128xf32> -> vector<8x128xf32>
    %c0_27 = arith.constant 0 : index
    %c0_28 = arith.constant 0 : index
    %36 = vector.load %arg11[%c0_27, %c0_28] : memref<1x128xf32, #tpu.memory_space<vmem>>, vector<1x128xf32>
    %37 = vector.broadcast %36 : vector<1x128xf32> to vector<8x128xf32>
    %38 = arith.addf %35, %37 : vector<8x128xf32>
    %c0_29 = arith.constant 0 : index
    %c0_30 = arith.constant 0 : index
    %39 = vector.load %arg12[%c0_29, %c0_30] : memref<8x128xf32, #tpu.memory_space<vmem>>, vector<8x128xf32>
    tpu.vector_store %arg12[%c0_29, %c0_30], %38 {strides = array<i32>} : memref<8x128xf32, #tpu.memory_space<vmem>>, vector<8x128xf32>,
    return
  }
  func.func @transform_0(%arg0: i32) -> (i32, i32) {
    %c0_i32 = arith.constant 0 : i32
    %c0_i32_0 = arith.constant 0 : i32
    return %arg0, %c0_i32 : i32, i32
  }
  func.func @transform_1(%arg0: i32) -> (i32, i32) {
    %c0_i32 = arith.constant 0 : i32
    %c0_i32_0 = arith.constant 0 : i32
    %c0_i32_1 = arith.constant 0 : i32
    return %c0_i32, %c0_i32_0 : i32, i32
  }
  func.func @transform_2(%arg0: i32) -> (i32, i32) {
    %c0_i32 = arith.constant 0 : i32
    %c0_i32_0 = arith.constant 0 : i32
    %c0_i32_1 = arith.constant 0 : i32
    return %c0_i32, %c0_i32_0 : i32, i32
  }
  func.func @transform_3(%arg0: i32) -> (i32, i32) {
    %c0_i32 = arith.constant 0 : i32
    %c0_i32_0 = arith.constant 0 : i32
    %c0_i32_1 = arith.constant 0 : i32
    return %c0_i32, %c0_i32_0 : i32, i32
  }
  func.func @transform_4(%arg0: i32) -> (i32, i32) {
    %c0_i32 = arith.constant 0 : i32
    %c0_i32_0 = arith.constant 0 : i32
    %c0_i32_1 = arith.constant 0 : i32
    return %c0_i32, %c0_i32_0 : i32, i32
  }
  func.func @transform_5(%arg0: i32) -> (i32, i32) {
    %c0_i32 = arith.constant 0 : i32
    %c0_i32_0 = arith.constant 0 : i32
    %c0_i32_1 = arith.constant 0 : i32
    return %c0_i32, %c0_i32_0 : i32, i32
  }
  func.func @transform_6(%arg0: i32) -> (i32, i32) {
    %c0_i32 = arith.constant 0 : i32
    %c0_i32_0 = arith.constant 0 : i32
    %c0_i32_1 = arith.constant 0 : i32
    return %c0_i32, %c0_i32_0 : i32, i32
  }
  func.func @transform_7(%arg0: i32) -> (i32, i32) {
    %c0_i32 = arith.constant 0 : i32
    %c0_i32_0 = arith.constant 0 : i32
    %c0_i32_1 = arith.constant 0 : i32
    return %c0_i32, %c0_i32_0 : i32, i32
  }
  func.func @transform_8(%arg0: i32) -> (i32, i32) {
    %c0_i32 = arith.constant 0 : i32
    %c0_i32_0 = arith.constant 0 : i32
    %c0_i32_1 = arith.constant 0 : i32
    return %c0_i32, %c0_i32_0 : i32, i32
  }
  func.func @transform_9(%arg0: i32) -> (i32, i32) {
    %c0_i32 = arith.constant 0 : i32
    %c0_i32_0 = arith.constant 0 : i32
    %c0_i32_1 = arith.constant 0 : i32
    return %c0_i32, %c0_i32_0 : i32, i32
  }
  func.func @transform_10(%arg0: i32) -> (i32, i32) {
    %c0_i32 = arith.constant 0 : i32
    %c0_i32_0 = arith.constant 0 : i32
    %c0_i32_1 = arith.constant 0 : i32
    return %c0_i32, %c0_i32_0 : i32, i32
  }
  func.func @transform_11(%arg0: i32) -> (i32, i32) {
    %c0_i32 = arith.constant 0 : i32
    %c0_i32_0 = arith.constant 0 : i32
    return %arg0, %c0_i32 : i32, i32
  }
}

</mosaic_0001>

<bundles_post_ra>
// kernel: tile.28
= control target key start
LH: loop header
LB: loop body
LE: loop exit
PB: predicated region body
PF: predicated region fallthrough
CT: control target
= control target key end

     0   :  { %s28_s0 = inlined_call_operand.vmem [shape: f32[32], index: 0, kind: input, shape index: {}]   ;;  %s29_s1 = inlined_call_operand.vmem [shape: f32[9,32], index: 1, kind: output, shape index: {}]  }
   0x1   :  { %v4_v0 = vld [vmem:[%s28_s0] ss:$0 sm:$0xff] }
   0x2   :  { %5 = vst [vmem:[%s29_s1] sm:$0xff] %v4_v0  ;;  %8 = vst [vmem:[%s29_s1 + $0x8] sm:$0xff] %v4_v0 }

// kernel: tile.29
= control target key start
LH: loop header
LB: loop body
LE: loop exit
PB: predicated region body
PF: predicated region fallthrough
CT: control target
= control target key end

     0   :  { %s6_s6 = smov 3  ;;  %s13_s11 = smov 3  ;;  %vm3_vm0 = vcmask 261120   ;;  %vm10_vm1 = vcmask 1048320   ;;  %vm17_vm2 = vcmask 785920   ;;  %vm24_vm3 = vcmask 523520   ;;  %s86_s0 = inlined_call_operand.vmem [shape: f32[9,32], index: 0, kind: input, shape index: {}]   ;;  %s87_s1 = inlined_call_operand.vmem [shape: f32[1,288], index: 1, kind: output, shape index: {}]  }
   0x1   :  { %v2_v0 = vld [vmem:[%s86_s0] ss:$4 sm:$0x7]   ;;  %v44_v1 = vld [vmem:[%s86_s0 + $0x3] ss:$4 sm:%s6_s6]   ;;  %s52_s12 = smov 96  }
   0x2   :  { %8 = vrot.lane.b32.xlu0 %v44_v1, %s52_s12  ;;  %s20_s13 = smov 3  ;;  %4 = vst.msk [vmem:[#allocation0] ss:$8 sm:$0x7] %vm3_vm0, %v2_v0   ;;  %v45_v2 = vld [vmem:[%s86_s0 + $0x2] ss:$4 sm:%s13_s11]  }
   0x3   :  { %v46_v3 = vld [vmem:[%s86_s0 + $0x1] ss:$4 sm:%s20_s13]   ;;  %s53_s0 = smov 32   ;;  %s54_s18 = smov 64  }
   0x4   :  { %22 = vrot.lane.b32.xlu1 %v46_v3, %s53_s0 }
   0x6   :  { %15 = vrot.lane.b32.xlu0 %v45_v2, %s54_s18 }
   0x9   :  { %v38_v4 = vld [vmem:[#allocation0 + $0x10] sm:$0x1] }
   0xa   :  { %48 = vst [vmem:[%s87_s1 + $0x2] sm:$0x1] %v38_v4 }
  0x74   :  { %v9_v5 = vpop.permute.xlu0 %8  }
  0x75   :  { %11 = vst.msk [vmem:[#allocation0] ss:$8 sm:$0x3] %vm10_vm1, %v9_v5  }
  0x76   :  { %v23_v6 = vpop.permute.xlu1 %22  }
  0x78   :  { %v16_v7 = vpop.permute.xlu0 %15  }
  0x79   :  { %18 = vst.msk [vmem:[#allocation0] ss:$8 sm:$0x3] %vm17_vm2, %v16_v7  }
  0x7a   :  { %25 = vst.msk [vmem:[#allocation0] ss:$8 sm:$0x3] %vm24_vm3, %v23_v6  }
  0x81   :  { %v29_v8 = vld [vmem:[#allocation0] sm:$0x1]  ;;  %v33_v9 = vld [vmem:[#allocation0 + $0x8] sm:$0x1] }
  0x82   :  { %31 = vst [vmem:[%s87_s1] sm:$0x1] %v29_v8  ;;  %47 = vst [vmem:[%s87_s1 + $0x1] sm:$0x1] %v33_v9 }

// kernel: tile.23
= control target key start
LH: loop header
LB: loop body
LE: loop exit
PB: predicated region body
PF: predicated region fallthrough
CT: control target
= control target key end

     0   :  { %s28_s0 = inlined_call_operand.vmem [shape: f32[16], index: 0, kind: input, shape index: {}]   ;;  %s29_s1 = inlined_call_operand.vmem [shape: f32[9,16], index: 1, kind: output, shape index: {}]  }
   0x1   :  { %v4_v0 = vld [vmem:[%s28_s0] ss:$0 sm:$0xff] }
   0x2   :  { %5 = vst [vmem:[%s29_s1] sm:$0xff] %v4_v0  ;;  %8 = vst [vmem:[%s29_s1 + $0x8] sm:$0xff] %v4_v0 }

// kernel: tile.24
= control target key start
LH: loop header
LB: loop body
LE: loop exit
PB: predicated region body
PF: predicated region fallthrough
CT: control target
= control target key end

     0   :  { %s74_s10 = smov 112   ;;  %s75_s11 = smov 80   ;;  %vm4_vm0 = vcmask 130048   ;;  %vm10_vm1 = vcmask 1048448   ;;  %vm16_vm2 = vcmask 917248   ;;  %vm22_vm3 = vcmask 786048   ;;  %s121_s0 = inlined_call_operand.vmem [shape: f32[9,16], index: 0, kind: input, shape index: {}]   ;;  %s122_s1 = inlined_call_operand.vmem [shape: f32[1,144], index: 1, kind: output, shape index: {}]  }
   0x1   :  { %v59_v0 = vld [vmem:[%s121_s0 + $0x7] sm:$0x1]   ;;  %v61_v1 = vld [vmem:[%s121_s0 + $0x5] sm:$0x1]   ;;  %v60_v2 = vld [vmem:[%s121_s0 + $0x6] sm:$0x1]  }
   0x2   :  { %8 = vrot.lane.b32.xlu0 %v59_v0, %s74_s10  ;;  %20 = vrot.lane.b32.xlu1 %v61_v1, %s75_s11  ;;  %v62_v3 = vld [vmem:[%s121_s0 + $0x4] sm:$0x1]   ;;  %s2_s16 = smov 3  ;;  %s76_s19 = smov 96   ;;  %v63_v5 = vld [vmem:[%s121_s0 + $0x3] sm:$0x1]  }
   0x3   :  { %v3_v4 = vld [vmem:[%s121_s0] ss:$8 sm:%s2_s16]   ;;  %s77_s20 = smov 64   ;;  %v64_v6 = vld [vmem:[%s121_s0 + $0x2] sm:$0x1]   ;;  %s78_s25 = smov 48  }
   0x4   :  { %5 = vst.msk [vmem:[#allocation0] ss:$8 sm:$0x3] %vm4_vm0, %v3_v4   ;;  %s79_s26 = smov 32   ;;  %v65_v7 = vld [vmem:[%s121_s0 + $0x1] sm:$0x1]  }
   0x5   :  { %s80_s0 = smov 16   ;;  %vm28_vm4 = vcmask 654848   ;;  %vm34_vm5 = vcmask 523648   ;;  %vm40_vm6 = vcmask 392448   ;;  %vm46_vm7 = vcmask 261248  }
   0x6   :  { %14 = vrot.lane.b32.xlu0 %v60_v2, %s76_s19  ;;  %26 = vrot.lane.b32.xlu1 %v62_v3, %s77_s20 }
   0xa   :  { %32 = vrot.lane.b32.xlu0 %v63_v5, %s78_s25  ;;  %38 = vrot.lane.b32.xlu1 %v64_v6, %s79_s26 }
   0xb   :  { %v55_v8 = vld [vmem:[#allocation0 + $0x8] sm:$0x1] }
   0xc   :  { %66 = vst [vmem:[%s122_s1 + $0x1] sm:$0x1] %v55_v8 }
   0xe   :  { %44 = vrot.lane.b32.xlu0 %v65_v7, %s80_s0 }
  0x74   :  { %v9_v9 = vpop.permute.xlu0 %8   ;;  %v21_v10 = vpop.permute.xlu1 %20  }
  0x75   :  { %11 = vst.msk [vmem:[#allocation0] sm:$0x1] %vm10_vm1, %v9_v9  }
  0x78   :  { %v15_v11 = vpop.permute.xlu0 %14   ;;  %v27_v12 = vpop.permute.xlu1 %26  }
  0x79   :  { %17 = vst.msk [vmem:[#allocation0] sm:$0x1] %vm16_vm2, %v15_v11  }
  0x7a   :  { %23 = vst.msk [vmem:[#allocation0] sm:$0x1] %vm22_vm3, %v21_v10  }
  0x7b   :  { %29 = vst.msk [vmem:[#allocation0] sm:$0x1] %vm28_vm4, %v27_v12  }
  0x7c   :  { %v33_v13 = vpop.permute.xlu0 %32   ;;  %v39_v14 = vpop.permute.xlu1 %38  }
  0x7d   :  { %35 = vst.msk [vmem:[#allocation0] sm:$0x1] %vm34_vm5, %v33_v13  }
  0x7e   :  { %41 = vst.msk [vmem:[#allocation0] sm:$0x1] %vm40_vm6, %v39_v14  }
  0x80   :  { %v45_v15 = vpop.permute.xlu0 %44  }
  0x81   :  { %47 = vst.msk [vmem:[#allocation0] sm:$0x1] %vm46_vm7, %v45_v15  }
  0x88   :  { %v51_v16 = vld [vmem:[#allocation0] sm:$0x1] }
  0x89   :  { %53 = vst [vmem:[%s122_s1] sm:$0x1] %v51_v16 }

// kernel: tile.19
= control target key start
LH: loop header
LB: loop body
LE: loop exit
PB: predicated region body
PF: predicated region fallthrough
CT: control target
= control target key end

     0   :  { %s75_s10 = smov 64   ;;  %s76_s11 = smov 48   ;;  %vm3_vm0 = vcmask 64512   ;;  %vm9_vm1 = vcmask 589312   ;;  %vm15_vm2 = vcmask 523712   ;;  %vm21_vm3 = vcmask 458112   ;;  %s123_s0 = inlined_call_operand.vmem [shape: f32[9,8], index: 0, kind: input, shape index: {}]   ;;  %s124_s1 = inlined_call_operand.vmem [shape: f32[1,72], index: 1, kind: output, shape index: {}]  }
   0x1   :  { %v59_v0 = vld [vmem:[%s123_s0 + $0x8] sm:$0x1]   ;;  %v61_v1 = vld [vmem:[%s123_s0 + $0x6] sm:$0x1]   ;;  %v60_v2 = vld [vmem:[%s123_s0 + $0x7] sm:$0x1]  }
   0x2   :  { %7 = vrot.lane.b32.xlu0 %v59_v0, %s75_s10  ;;  %19 = vrot.lane.b32.xlu1 %v61_v1, %s76_s11  ;;  %v62_v3 = vld [vmem:[%s123_s0 + $0x5] sm:$0x1]   ;;  %v2_v4 = vld [vmem:[%s123_s0] sm:$0x1]   ;;  %s77_s18 = smov 56   ;;  %s78_s19 = smov 40  }
   0x3   :  { %4 = vst.msk [vmem:[#allocation0] sm:$0x1] %vm3_vm0, %v2_v4   ;;  %v63_v5 = vld [vmem:[%s123_s0 + $0x4] sm:$0x1]   ;;  %v64_v6 = vld [vmem:[%s123_s0 + $0x3] sm:$0x1]  }
   0x4   :  { %s79_s24 = smov 32   ;;  %s80_s25 = smov 24   ;;  %v65_v7 = vld [vmem:[%s123_s0 + $0x2] sm:$0x1]   ;;  %v66_v8 = vld [vmem:[%s123_s0 + $0x1] sm:$0x1]  }
   0x5   :  { %s81_s0 = smov 16   ;;  %s82_s30 = smov 8   ;;  %vm27_vm4 = vcmask 392512   ;;  %vm33_vm5 = vcmask 326912   ;;  %vm39_vm6 = vcmask 261312   ;;  %vm45_vm7 = vcmask 195712  }
   0x6   :  { %13 = vrot.lane.b32.xlu0 %v60_v2, %s77_s18  ;;  %25 = vrot.lane.b32.xlu1 %v62_v3, %s78_s19  ;;  %vm51_vm8 = vcmask 130112  }
   0xa   :  { %31 = vrot.lane.b32.xlu0 %v63_v5, %s79_s24  ;;  %37 = vrot.lane.b32.xlu1 %v64_v6, %s80_s25 }
   0xe   :  { %43 = vrot.lane.b32.xlu0 %v65_v7, %s81_s0  ;;  %49 = vrot.lane.b32.xlu1 %v66_v8, %s82_s30 }
  0x74   :  { %v8_v9 = vpop.permute.xlu0 %7   ;;  %v20_v10 = vpop.permute.xlu1 %19  }
  0x75   :  { %10 = vst.msk [vmem:[#allocation0] sm:$0x1] %vm9_vm1, %v8_v9  }
  0x78   :  { %v14_v11 = vpop.permute.xlu0 %13   ;;  %v26_v12 = vpop.permute.xlu1 %25  }
  0x79   :  { %16 = vst.msk [vmem:[#allocation0] sm:$0x1] %vm15_vm2, %v14_v11  }
  0x7a   :  { %22 = vst.msk [vmem:[#allocation0] sm:$0x1] %vm21_vm3, %v20_v10  }
  0x7b   :  { %28 = vst.msk [vmem:[#allocation0] sm:$0x1] %vm27_vm4, %v26_v12  }
  0x7c   :  { %v32_v13 = vpop.permute.xlu0 %31   ;;  %v38_v14 = vpop.permute.xlu1 %37  }
  0x7d   :  { %34 = vst.msk [vmem:[#allocation0] sm:$0x1] %vm33_vm5, %v32_v13  }
  0x7e   :  { %40 = vst.msk [vmem:[#allocation0] sm:$0x1] %vm39_vm6, %v38_v14  }
  0x80   :  { %v44_v15 = vpop.permute.xlu0 %43   ;;  %v50_v16 = vpop.permute.xlu1 %49  }
  0x81   :  { %46 = vst.msk [vmem:[#allocation0] sm:$0x1] %vm45_vm7, %v44_v15  }
  0x82   :  { %52 = vst.msk [vmem:[#allocation0] sm:$0x1] %vm51_vm8, %v50_v16  }
  0x89   :  { %v56_v17 = vld [vmem:[#allocation0] sm:$0x1] }
  0x8a   :  { %58 = vst [vmem:[%s124_s1] sm:$0x1] %v56_v17 }

// kernel: actor_critic_forward.1
= control target key start
LH: loop header
LB: loop body
LE: loop exit
PB: predicated region body
PF: predicated region fallthrough
CT: control target
= control target key end

     0   :  { %vm59_vm0 = vcmask 1043456   ;;  %vm60_vm1 = vcmask 1044480   ;;  %v1098_v0 = vmov 0.0   ;;  %v1099_v2 = vmov 65535   ;;  %s1416_s1 = inlined_call_operand.vmem [shape: bf16[9,72], index: 1, kind: input, shape index: {}]   ;;  %s1417_s0 = inlined_call_operand.vmem [shape: f32[8,9], index: 0, kind: input, shape index: {}]   ;;  %s1418_s3 = inlined_call_operand.vmem [shape: bf16[72,144], index: 3, kind: input, shape index: {}]   ;;  %s1419_s5 = inlined_call_operand.vmem [shape: bf16[144,288], index: 5, kind: input, shape index: {}]   ;;  %s1420_s2 = inlined_call_operand.vmem [shape: f32[1,72], index: 2, kind: input, shape index: {}]   ;;  %s1421_s7 = inlined_call_operand.vmem [shape: bf16[288,120], index: 7, kind: input, shape index: {}]   ;;  %s1422_s4 = inlined_call_operand.vmem [shape: f32[1,144], index: 4, kind: input, shape index: {}]   ;;  %s1423_s9 = inlined_call_operand.vmem [shape: bf16[120,128], index: 9, kind: input, shape index: {}]   ;;  %s1424_s6 = inlined_call_operand.vmem [shape: f32[1,288], index: 6, kind: input, shape index: {}]   ;;  %s1425_s8 = inlined_call_operand.vmem [shape: f32[1,120], index: 8, kind: input, shape index: {}]   ;;  %s1426_s10 = inlined_call_operand.vmem [shape: f32[1,128], index: 10, kind: input, shape index: {}]   ;;  %s1427_s11 = inlined_call_operand.vmem [shape: f32[8,128], index: 11, kind: output, shape index: {}]  }
   0x1   :  { %983 = vmatprep.subr.bf16.mxu0 %v1098_v0  ;;  %v1021_v1 = vld [vmem:[%s1416_s1] sm:$0x1f]   ;;  %v61_v3 = vsel %vm59_vm0, 4294967295, %v1099_v2  ;;  %vm1100_vm2 = vmmov 0   ;;  %v1025_v9 = vld [vmem:[%s1418_s3 + $0x14] ss:$8 sps:$4 sm:$0xff]   ;;  %v119_v57 = vlaneseq }
   0x2   :  { %v39_v4 = vld [vmem:[%s1417_s0] sm:$0xff]  ;;  %v62_v5 = vsel %vm60_vm1, %v61_v3, 0  ;;  %985 = vmatprep.mubr.msk.bf16.mxu0 %vm1100_vm2, %v1098_v0  ;;  %vm55_vm3 = vcmask 72704   ;;  %v1027_v11 = vld [vmem:[%s1418_s3 + $0x10] ss:$8 sps:$4 sm:$0xff]   ;;  %v1101_v20 = vmov 0  }
   0x3   :  { %v1022_v6 = vld [vmem:[%s1418_s3 + $0x4] ss:$8 sps:$4 sm:$0xff]   ;;  %v1024_v7 = vld [vmem:[%s1418_s3] ss:$8 sps:$4 sm:$0xff]   ;;  %v64_v8 = vand.u32 %v1021_v1, %v62_v5  ;;  %v40_v10 = vpack.c.bf16 %v39_v4, %v39_v4  ;;  %v1031_v14 = vld [vmem:[%s1418_s3 + $0x34] ss:$8 sps:$4 sm:$0xff]   ;;  %216 = vmatprep.mubr.bf16.mxu1 %v1101_v20 }
   0x4   :  { %184 = vmatprep.subr.bf16.mxu1 %v1022_v6  ;;  %v1028_v12 = vld [vmem:[%s1418_s3 + $0x24] ss:$8 sps:$4 sm:$0xff]   ;;  %v1030_v13 = vld [vmem:[%s1418_s3 + $0x20] ss:$8 sps:$4 sm:$0xff]   ;;  %v1033_v15 = vld [vmem:[%s1418_s3 + $0x30] ss:$8 sps:$4 sm:$0xff]  }
   0x5   :  { %984 = vmatpush3.bf16.msra.mxu0 %v64_v8  ;;  %185 = vmatpush1.bf16.msra.mxu1 %v1024_v7  ;;  %v116_v16 = vld [vmem:[%s1418_s3 + $0x40] sm:$0xff]  ;;  %v1042_v23 = vld [vmem:[%s1419_s5 + $0x1c] ss:$12 sps:$4 sm:$0xff]   ;;  %v1050_v27 = vld [vmem:[%s1419_s5 + $0x4c] ss:$12 sps:$4 sm:$0xff]   ;;  %vm174_vm4 = vcmask 588800  }
   0x6   :  { %186 = vmatprep.subr.bf16.mxu1 %v1025_v9  ;;  %v885_v17 = vcombine.high %v116_v16, %v116_v16  ;;  %v884_v18 = vcombine.low %v116_v16, %v116_v16  ;;  %v1036_v21 = vld [vmem:[%s1419_s5] ss:$12 sps:$4 sm:$0xff]   ;;  %v1038_v22 = vld [vmem:[%s1419_s5 + $0x4] ss:$12 sps:$4 sm:$0xff]   ;;  %v1048_v28 = vld [vmem:[%s1419_s5 + $0x48] ss:$12 sps:$4 sm:$0xff]  }
   0x7   :  { %430 = vmatprep.subr.bf16.mxu0 %v1038_v22  ;;  %v1040_v24 = vld [vmem:[%s1419_s5 + $0x18] ss:$12 sps:$4 sm:$0xff]   ;;  %v1046_v25 = vld [vmem:[%s1419_s5 + $0x34] ss:$12 sps:$4 sm:$0xff]   ;;  %v1044_v26 = vld [vmem:[%s1419_s5 + $0x30] ss:$12 sps:$4 sm:$0xff]  }
   0x8   :  { %986 = vmatmul.mubr.msk.bf16.vlgmr.msra.gmra.mrb[0].mxu0 %vm55_vm3, %v40_v10  ;;  %v179_v19 = vsel %vm59_vm0, %v884_v18, 0  ;;  %v1054_v29 = vld [vmem:[%s1419_s5 + $0x64] ss:$12 sps:$4 sm:$0xff]   ;;  %v1052_v30 = vld [vmem:[%s1419_s5 + $0x60] ss:$12 sps:$4 sm:$0xff]   ;;  %v1299_v58 = vshrl.u32 %v119_v57, 7 }
   0x9   :  { %187 = vmatpush1.bf16.msra.mxu1 %v1027_v11  ;;  %431 = vmatpush1.bf16.msra.mxu0 %v1036_v21  ;;  %v1058_v31 = vld [vmem:[%s1419_s5 + $0x7c] ss:$12 sps:$4 sm:$0xff]   ;;  %v1056_v32 = vld [vmem:[%s1419_s5 + $0x78] ss:$12 sps:$4 sm:$0xff]   ;;  %v1062_v33 = vld [vmem:[%s1419_s5 + $0x94] ss:$12 sps:$4 sm:$0xff]  }
   0xa   :  { %188 = vmatprep.subr.bf16.mxu1 %v1028_v12  ;;  %432 = vmatprep.subr.bf16.mxu0 %v1042_v23  ;;  %v1060_v34 = vld [vmem:[%s1419_s5 + $0x90] ss:$12 sps:$4 sm:$0xff]   ;;  %v873_v35 = vld [vmem:[%s1420_s2] ss:$0 sm:$0xff]  ;;  %v1039_v42 = vld [vmem:[%s1419_s5 + $0x8] ss:$12 sps:$4 sm:$0xff]  }
   0xb   :  { %v1043_v44 = vld [vmem:[%s1419_s5 + $0x20] ss:$12 sps:$4 sm:$0xff]   ;;  %v1047_v45 = vld [vmem:[%s1419_s5 + $0x38] ss:$12 sps:$4 sm:$0xff]   ;;  %v1051_v46 = vld [vmem:[%s1419_s5 + $0x50] ss:$12 sps:$4 sm:$0xff]  }
   0xc   :  { %v1055_v47 = vld [vmem:[%s1419_s5 + $0x68] ss:$12 sps:$4 sm:$0xff]   ;;  %v1059_v48 = vld [vmem:[%s1419_s5 + $0x80] ss:$12 sps:$4 sm:$0xff]   ;;  %v1063_v49 = vld [vmem:[%s1419_s5 + $0x98] ss:$12 sps:$4 sm:$0xff]  }
   0xd   :  { %189 = vmatpush1.bf16.msra.mxu1 %v1030_v13  ;;  %433 = vmatpush1.bf16.msra.mxu0 %v1040_v24  ;;  %v1066_v50 = vld [vmem:[%s1419_s5 + $0xac] ss:$12 sps:$4 sm:$0xff]   ;;  %v1064_v51 = vld [vmem:[%s1419_s5 + $0xa8] ss:$12 sps:$4 sm:$0xff]   ;;  %v1067_v52 = vld [vmem:[%s1419_s5 + $0xb0] ss:$12 sps:$4 sm:$0xff]  }
   0xe   :  { %190 = vmatprep.subr.bf16.mxu1 %v1031_v14  ;;  %434 = vmatprep.subr.bf16.mxu0 %v1046_v25  ;;  %v1070_v53 = vld [vmem:[%s1419_s5 + $0xc4] ss:$12 sps:$4 sm:$0xff]   ;;  %v1068_v54 = vld [vmem:[%s1419_s5 + $0xc0] ss:$12 sps:$4 sm:$0xff]   ;;  %v1071_v55 = vld [vmem:[%s1419_s5 + $0xc8] ss:$12 sps:$4 sm:$0xff]  }
   0xf   :  { %v1072_v56 = vld [vmem:[%s1421_s7 + $0x40] sm:$0xff]   ;;  %v121_v59 = vsub.s32 0, %v1299_v58  ;;  %v125_v61 = vsub.s32 1, %v1299_v58  ;;  %vm426_vm5 = vcmask 130048   ;;  %v1074_v12 = vld [vmem:[%s1421_s7 + $0x48] sm:$0xff]   ;;  %v1076_v14 = vld [vmem:[%s1421_s7 + $0x50] sm:$0xff]  }
  0x10   :  { %v117_v60 = vld [vmem:[%s1422_s4] sm:$0x3]  ;;  %v1075_v13 = vld [vmem:[%s1421_s7 + $0x8] sm:$0xff]   ;;  %v1078_v16 = vld [vmem:[%s1421_s7 + $0x58] sm:$0xff]   ;;  %vm668_vm6 = vcmask 261120   ;;  %vm821_vm7 = vcmask 982016  }
  0x11   :  { %191 = vmatpush1.bf16.msra.mxu1 %v1033_v15  ;;  %435 = vmatpush1.bf16.msra.mxu0 %v1044_v26  ;;  %v122_v62 = vrot.slane %v117_v60, %v121_v59  ;;  %v126_v63 = vrot.slane %v117_v60, %v125_v61  ;;  %v1073_v10 = vld [vmem:[%s1421_s7] sm:$0xff]   ;;  %v1077_v15 = vld [vmem:[%s1421_s7 + $0x10] sm:$0xff]   ;;  %v1083_v21 = vld [vmem:[%s1421_s7 + $0x28] sm:$0xff]  }
  0x12   :  { %886 = vmatprep.subr.msk.bf16.mxu1 %vm59_vm0, %v885_v17  ;;  %436 = vmatprep.subr.bf16.mxu0 %v1050_v27  ;;  %v1079_v17 = vld [vmem:[%s1421_s7 + $0x18] sm:$0xff]   ;;  %v1080_v18 = vld [vmem:[%s1421_s7 + $0x60] sm:$0xff]   ;;  %v1084_v22 = vld [vmem:[%s1421_s7 + $0x70] sm:$0xff]  }
  0x13   :  { %v1085_v23 = vld [vmem:[%s1421_s7 + $0x30] sm:$0xff]   ;;  %v1086_v24 = vld [vmem:[%s1421_s7 + $0x78] sm:$0xff]   ;;  %v1090_v26 = vld [vmem:[%s1423_s9] sm:$0xff]  }
  0x14   :  { %v1087_v25 = vld [vmem:[%s1421_s7 + $0x38] sm:$0xff]   ;;  %v1091_v27 = vld [vmem:[%s1423_s9 + $0x8] sm:$0xff]  }
  0x15   :  { %193 = vmatpush1.bf16.msra.mxu1 %v179_v19  ;;  %437 = vmatpush1.bf16.msra.mxu0 %v1048_v28  ;;  %v1081_v19 = vld [vmem:[%s1421_s7 + $0x20] sm:$0xff]   ;;  %v1092_v28 = vld [vmem:[%s1423_s9 + $0x10] sm:$0xff]   ;;  %v1097_v57 = vld [vmem:[%s1423_s9 + $0x38] ss:$0 sps:$4 sm:$0xff]  }
  0x16   :  { %471 = vmatprep.subr.bf16.mxu1 %v1101_v20  ;;  %438 = vmatprep.subr.bf16.mxu0 %v1054_v29  ;;  %v1093_v29 = vld [vmem:[%s1423_s9 + $0x18] sm:$0xff]  }
  0x19   :  { %439 = vmatpush1.bf16.msra.mxu0 %v1052_v30  ;;  %v265_v30 = vld [vmem:[%s1424_s6] sm:$0x7] }
  0x1a   :  { %440 = vmatprep.subr.bf16.mxu0 %v1058_v31  ;;  %v270_v31 = vrot.slane %v265_v30, %v121_v59 }
  0x1d   :  { %441 = vmatpush1.bf16.msra.mxu0 %v1056_v32  ;;  %v274_v32 = vrot.slane %v265_v30, %v125_v61 }
  0x1e   :  { %442 = vmatprep.subr.bf16.mxu0 %v1062_v33  ;;  %v277_v33 = vsub.s32 2, %v1299_v58  ;;  %v826_v58 = vsel %vm59_vm0, %v1097_v57, 0 }
  0x21   :  { %443 = vmatpush1.bf16.msra.mxu0 %v1060_v34 }
  0x22   :  { %444 = vmatprep.subr.bf16.mxu0 %v1066_v50 }
  0x25   :  { %445 = vmatpush1.bf16.msra.mxu0 %v1064_v51  ;;  %v1089_v51 = vld [vmem:[%s1421_s7 + $0x88] sm:$0xff]  }
  0x26   :  { %446 = vmatprep.subr.bf16.mxu0 %v1070_v53 }
  0x29   :  { %447 = vmatpush1.bf16.msra.mxu0 %v1068_v54  ;;  %v1094_v54 = vld [vmem:[%s1423_s9 + $0x20] sm:$0xff]  }
  0x2a   :  { %949 = vmatprep.subr.bf16.mxu0 %v1072_v56  ;;  %v1096_v56 = vld [vmem:[%s1423_s9 + $0x30] sm:$0xff]  }
  0xdb   :  { %v100_v36 = vpop.f32.mrb[0].mxu0 }
  0xdc   :  { %v101_v37 = vadd.f32 %v873_v35, %v100_v36  ;;  %v987_v38 = vpop.f32.mrb[1].mxu0 }
  0xdd   :  { %v103_v39 = vpop.f32.mrb[2].mxu0 }
  0xde   :  { %v106_v40 = vmax.f32 %v101_v37, 0.0  ;;  %v988_v41 = vpop.f32.mrb[3].mxu0 }
  0xe0   :  { %v107_v43 = vpack.c.bf16 %v106_v40, %v106_v40 }
  0xe2   :  { %887 = vmatmul.mubr.msk.bf16.vlgmr.msra.gmra.mrb[0].mxu1 %vm174_vm4, %v107_v43  ;;  %v278_v43 = vrot.slane %v265_v30, %v277_v33 }
  0xe3   :  { %472 = vmatpush1.bf16.msra.mxu1 %v1039_v42 }
  0xe4   :  { %473 = vmatprep.subr.bf16.mxu1 %v1101_v20 }
  0xe7   :  { %474 = vmatpush1.bf16.msra.mxu1 %v1043_v44 }
  0xe8   :  { %475 = vmatprep.subr.bf16.mxu1 %v1101_v20 }
  0xeb   :  { %476 = vmatpush1.bf16.msra.mxu1 %v1047_v45 }
  0xec   :  { %477 = vmatprep.subr.bf16.mxu1 %v1101_v20 }
  0xef   :  { %478 = vmatpush1.bf16.msra.mxu1 %v1051_v46 }
  0xf0   :  { %479 = vmatprep.subr.bf16.mxu1 %v1101_v20 }
  0xf3   :  { %480 = vmatpush1.bf16.msra.mxu1 %v1055_v47 }
  0xf4   :  { %481 = vmatprep.subr.bf16.mxu1 %v1101_v20 }
  0xf7   :  { %482 = vmatpush1.bf16.msra.mxu1 %v1059_v48  ;;  %v1088_v48 = vld [vmem:[%s1421_s7 + $0x80] sm:$0xff]  }
  0xf8   :  { %483 = vmatprep.subr.bf16.mxu1 %v1101_v20 }
  0xfb   :  { %484 = vmatpush1.bf16.msra.mxu1 %v1063_v49 }
  0xfc   :  { %485 = vmatprep.subr.bf16.mxu1 %v1101_v20 }
  0xff   :  { %486 = vmatpush1.bf16.msra.mxu1 %v1067_v52 }
 0x100   :  { %487 = vmatprep.subr.bf16.mxu1 %v1101_v20  ;;  %v1082_v20 = vld [vmem:[%s1421_s7 + $0x68] sm:$0xff]  }
 0x103   :  { %488 = vmatpush1.bf16.msra.mxu1 %v1071_v55  ;;  %v1095_v55 = vld [vmem:[%s1423_s9 + $0x28] sm:$0xff]  }
 0x104   :  { %997 = vmatprep.subr.bf16.mxu1 %v1098_v0 }
 0x1b5   :  { %v218_v1 = vpop.f32.mrb[0].mxu1 }
 0x1b6   :  { %v219_v2 = vadd.f32 %v218_v1, %v122_v62  ;;  %v220_v3 = vpop.f32.mrb[1].mxu1  ;;  %v917_v1 = vld [vmem:[%s1425_s8] ss:$0 sm:$0xff] }
 0x1b7   :  { %v221_v4 = vadd.f32 %v220_v3, %v126_v63  ;;  %v222_v5 = vpop.f32.mrb[2].mxu1 }
 0x1b8   :  { %v225_v6 = vmax.f32 %v219_v2, 0.0  ;;  %v223_v7 = vpop.f32.mrb[3].mxu1 }
 0x1b9   :  { %v226_v8 = vmax.f32 %v221_v4, 0.0 }
 0x1ba   :  { %v227_v11 = vpack.c.bf16 %v225_v6, %v225_v6 }
 0x1bb   :  { %v228_v9 = vpack.c.bf16 %v226_v8, %v226_v8 }
 0x1bd   :  { %915 = vmatprep.mubr.msk.bf16.mxu0 %vm426_vm5, %v228_v9  ;;  %916 = vmatprep.mubr.msk.bf16.mxu1 %vm426_vm5, %v228_v9  ;;  %v937_v9 = vld [vmem:[%s1426_s10] ss:$0 sm:$0xff] }
 0x1be   :  { %463 = vmatmul.mubr.bf16.vlgmr.msra.gmra.mrb[4].mxu0 %v227_v11  ;;  %504 = vmatmul.mubr.bf16.vlgmr.msra.gmra.mrb[4].mxu1 %v227_v11 }
 0x1bf   :  { %950 = vmatpush3.bf16.msra.mxu0 %v1073_v10  ;;  %1013 = vmatprep.mubr.msk.bf16.mxu1 %vm1100_vm2, %v1098_v0 }
 0x1c0   :  { %951 = vmatprep.subr.bf16.mxu0 %v1074_v12  ;;  %998 = vmatpush3.bf16.msra.mxu1 %v1090_v26 }
 0x1c1   :  { %999 = vmatprep.subr.bf16.mxu1 %v1098_v0 }
 0x1c3   :  { %952 = vmatpush3.bf16.msra.mxu0 %v1075_v13 }
 0x1c4   :  { %953 = vmatprep.subr.bf16.mxu0 %v1076_v14  ;;  %1000 = vmatpush3.bf16.msra.mxu1 %v1091_v27 }
 0x1c5   :  { %1001 = vmatprep.subr.bf16.mxu1 %v1098_v0 }
 0x1c7   :  { %954 = vmatpush3.bf16.msra.mxu0 %v1077_v15 }
 0x1c8   :  { %955 = vmatprep.subr.bf16.mxu0 %v1078_v16  ;;  %1002 = vmatpush3.bf16.msra.mxu1 %v1092_v28 }
 0x1c9   :  { %1003 = vmatprep.subr.bf16.mxu1 %v1098_v0 }
 0x1cb   :  { %956 = vmatpush3.bf16.msra.mxu0 %v1079_v17 }
 0x1cc   :  { %957 = vmatprep.subr.bf16.mxu0 %v1080_v18  ;;  %1004 = vmatpush3.bf16.msra.mxu1 %v1093_v29 }
 0x1cd   :  { %1005 = vmatprep.subr.bf16.mxu1 %v1098_v0 }
 0x1cf   :  { %958 = vmatpush3.bf16.msra.mxu0 %v1081_v19 }
 0x1d0   :  { %959 = vmatprep.subr.bf16.mxu0 %v1082_v20  ;;  %1006 = vmatpush3.bf16.msra.mxu1 %v1094_v54 }
 0x1d1   :  { %1007 = vmatprep.subr.bf16.mxu1 %v1098_v0 }
 0x1d3   :  { %960 = vmatpush3.bf16.msra.mxu0 %v1083_v21 }
 0x1d4   :  { %961 = vmatprep.subr.bf16.mxu0 %v1084_v22  ;;  %1008 = vmatpush3.bf16.msra.mxu1 %v1095_v55 }
 0x1d5   :  { %1009 = vmatprep.subr.bf16.mxu1 %v1098_v0 }
 0x1d7   :  { %962 = vmatpush3.bf16.msra.mxu0 %v1085_v23 }
 0x1d8   :  { %963 = vmatprep.subr.bf16.mxu0 %v1086_v24  ;;  %1010 = vmatpush3.bf16.msra.mxu1 %v1096_v56 }
 0x1d9   :  { %1011 = vmatprep.subr.bf16.mxu1 %v1098_v0 }
 0x1db   :  { %964 = vmatpush3.bf16.msra.mxu0 %v1087_v25 }
 0x1dc   :  { %989 = vmatprep.subr.bf16.mxu0 %v1098_v0  ;;  %1012 = vmatpush3.bf16.msra.mxu1 %v826_v58 }
 0x291   :  { %v464_v34 = vpop.f32.mrb[4].mxu0  ;;  %v505_v35 = vpop.f32.mrb[4].mxu1 }
 0x292   :  { %v465_v36 = vadd.f32 %v464_v34, %v270_v31  ;;  %v466_v37 = vpop.f32.mrb[5].mxu0  ;;  %v507_v38 = vpop.f32.mrb[5].mxu1  ;;  %v506_v50 = vadd.f32 %v505_v35, %v278_v43 }
 0x293   :  { %v467_v39 = vadd.f32 %v466_v37, %v274_v32  ;;  %v468_v40 = vpop.f32.mrb[6].mxu0  ;;  %v508_v41 = vpop.f32.mrb[6].mxu1 }
 0x294   :  { %v511_v42 = vmax.f32 %v465_v36, 0.0  ;;  %v469_v44 = vpop.f32.mrb[7].mxu0  ;;  %v509_v45 = vpop.f32.mrb[7].mxu1  ;;  %v513_v52 = vmax.f32 %v506_v50, 0.0 }
 0x295   :  { %v512_v46 = vmax.f32 %v467_v39, 0.0 }
 0x296   :  { %v514_v49 = vpack.c.bf16 %v511_v42, %v511_v42  ;;  %v516_v53 = vpack.c.bf16 %v513_v52, %v513_v52 }
 0x297   :  { %v515_v47 = vpack.c.bf16 %v512_v46, %v512_v46 }
 0x299   :  { %704 = vmatprep.mubr.bf16.mxu0 %v515_v47 }
 0x29a   :  { %705 = vmatmul.mubr.bf16.vlgmr.msra.gmra.mrb[8].mxu0 %v514_v49 }
 0x29b   :  { %990 = vmatpush3.bf16.msra.mxu0 %v1088_v48  ;;  %993 = vmatprep.mubr.msk.bf16.mxu0 %vm1100_vm2, %v1098_v0 }
 0x29c   :  { %991 = vmatprep.subr.bf16.mxu0 %v1098_v0 }
 0x29f   :  { %992 = vmatpush3.bf16.msra.mxu0 %v1089_v51 }
 0x2a2   :  { %994 = vmatmul.mubr.msk.bf16.vlgmr.msra.gmra.mrb[12].mxu0 %vm668_vm6, %v516_v53 }
 0x36d   :  { %v965_v59 = vpop.f32.mrb[8].mxu0 }
 0x36e   :  { %v966_v60 = vpop.f32.mrb[9].mxu0 }
 0x36f   :  { %v967_v61 = vadd.f32 %v966_v60, %v965_v59  ;;  %v968_v62 = vpop.f32.mrb[10].mxu0 }
 0x370   :  { %v969_v63 = vpop.f32.mrb[11].mxu0 }
 0x371   :  { %v707_v2 = vadd.f32 %v967_v61, %v917_v1 }
 0x375   :  { %v746_v3 = vpop.f32.mrb[12].mxu0 }
 0x376   :  { %v747_v4 = vadd.f32 %v746_v3, %v707_v2  ;;  %v995_v0 = vpop.f32.mrb[13].mxu0 }
 0x377   :  { %v749_v5 = vpop.f32.mrb[14].mxu0 }
 0x378   :  { %v752_v6 = vmax.f32 %v747_v4, 0.0  ;;  %v996_v7 = vpop.f32.mrb[15].mxu0 }
 0x37a   :  { %v753_v8 = vpack.c.bf16 %v752_v6, %v752_v6 }
 0x37c   :  { %1014 = vmatmul.mubr.msk.bf16.vlgmr.msra.gmra.mrb[8].mxu1 %vm821_vm7, %v753_v8 }
 0x44f   :  { %v862_v10 = vpop.f32.mrb[8].mxu1 }
 0x450   :  { %v863_v11 = vadd.f32 %v937_v9, %v862_v10  ;;  %v1015_v12 = vpop.f32.mrb[9].mxu1 }
 0x451   :  { %v865_v13 = vpop.f32.mrb[10].mxu1 }
 0x452   :  { %868 = vst [vmem:[%s1427_s11] sm:$0xff] %v863_v11  ;;  %v1016_v14 = vpop.f32.mrb[11].mxu1 }

</bundles_post_ra>
